<compile_context>
chip_gen: v7x
topology: tpu7x:2x2x1
jax: 0.10.0
libtpu: 0.0.40
codegen_flags: <defaults>
</compile_context>

<pallas_src>
import functools

import jax
import jax.numpy as jnp
from jax.experimental import pallas as pl
from jax.experimental.pallas import tpu as pltpu


def _bn_relu_kernel(x_ref, gamma_ref, beta_ref, o_ref, *, eps: float, inv_r: float):
    # x_ref:     [C, R]   (R = N*H*W; the full per-channel reduction axis is in-block)
    # gamma_ref: [C, 1]
    # beta_ref:  [C, 1]
    xf = x_ref[...].astype(jnp.float32)

    # Two-pass per-channel batch statistics (biased variance, PyTorch training forward).
    mean = jnp.sum(xf, axis=1, keepdims=True) * inv_r          # [C, 1] lane reduction (XLU)
    xc = xf - mean                                             # centered activations
    var = jnp.sum(xc * xc, axis=1, keepdims=True) * inv_r      # [C, 1]
    inv_std = jax.lax.rsqrt(var + eps)                         # EUP rsqrt, off the VALU path

    scale = gamma_ref[...].astype(jnp.float32) * inv_std       # [C, 1]
    beta = beta_ref[...].astype(jnp.float32)                   # [C, 1]

    # y = max(gamma * (x - mean) / sqrt(var + eps) + beta, 0)
    o_ref[...] = jnp.maximum(xc * scale + beta, 0.0).astype(o_ref.dtype)


def batchnorm_relu(x_nchw, gamma, beta, eps: float = 1e-5):
    N, C, H, W = x_nchw.shape
    R = N * H * W

    # Channel-major 2D view.  For the module's N == 1 this is a free reshape
    # (no data movement); for N > 1 XLA inserts a transpose outside the kernel.
    x2d = jnp.moveaxis(x_nchw, 1, 0).reshape(C, R)
    g2d = gamma.reshape(C, 1)
    b2d = beta.reshape(C, 1)
    inv_r = 1.0 / float(R)

    # Single grid step: whole tensor in one VMEM-resident block (overhead-bound regime).
    # (On v7x a 2-way "parallel" channel split could use both TensorCores; left single-step
    #  here for portability since the win is marginal at this size.)
    out2d = pl.pallas_call(
        functools.partial(_bn_relu_kernel, eps=float(eps), inv_r=inv_r),
        out_shape=jax.ShapeDtypeStruct((C, R), x_nchw.dtype),
        grid=(1,),
        in_specs=[
            pl.BlockSpec((C, R), lambda i: (0, 0)),
            pl.BlockSpec((C, 1), lambda i: (0, 0)),
            pl.BlockSpec((C, 1), lambda i: (0, 0)),
        ],
        out_specs=pl.BlockSpec((C, R), lambda i: (0, 0)),
        compiler_params=pltpu.CompilerParams(
            dimension_semantics=("arbitrary",),
        ),
    )(x2d, g2d, b2d)

    return jnp.moveaxis(out2d.reshape(C, N, H, W), 0, 1)


def _reference(x_nchw, gamma, beta, eps=1e-5):
    mean = jnp.mean(x_nchw, axis=(0, 2, 3), keepdims=True)
    var = jnp.mean((x_nchw - mean) ** 2, axis=(0, 2, 3), keepdims=True)
    y = (x_nchw - mean) / jnp.sqrt(var + eps)
    y = y * gamma.reshape(1, -1, 1, 1) + beta.reshape(1, -1, 1, 1)
    return jnp.maximum(y, 0.0)


if __name__ == "__main__":
    # Small shapes consistent with the module's forward (NCHW, 7x7 spatial, N=1).
    N, C, H, W = 1, 64, 7, 7
    key = jax.random.PRNGKey(0)
    kx, kg, kb = jax.random.split(key, 3)
    x = jax.random.normal(kx, (N, C, H, W), dtype=jnp.float32)
    gamma = 1.0 + 0.1 * jax.random.normal(kg, (C,), dtype=jnp.float32)
    beta = 0.1 * jax.random.normal(kb, (C,), dtype=jnp.float32)

    out = batchnorm_relu(x, gamma, beta)
    out = jax.block_until_ready(out)

    ref = _reference(x, gamma, beta)
    assert out.shape == (N, C, H, W)
    assert jnp.allclose(out, ref, atol=1e-4, rtol=1e-4), "mismatch vs reference"
    print("KERNEL_OK")
</pallas_src>

<mosaic_0001>
module attributes {stable_mosaic.version = 11 : i64} {
  func.func @_bn_relu_kernel(%arg0: i32, %arg1: memref<64x49xf32, #tpu.memory_space<vmem>>, %arg2: memref<64x1xf32, #tpu.memory_space<vmem>>, %arg3: memref<64x1xf32, #tpu.memory_space<vmem>>, %arg4: memref<64x49xf32, #tpu.memory_space<vmem>>) attributes {dimension_semantics = [#tpu.dimension_semantics<arbitrary>], iteration_bounds = array<i64: 1>, scalar_prefetch = 0 : i64, scratch_operands = 0 : i64, tpu.core_type = #tpu.core_type<tc>, window_params = [{pipeline_mode = #tpu.pipeline_mode<synchronous>, transform_indices = @transform_0, window_bounds = array<i64: 64, 49>}, {pipeline_mode = #tpu.pipeline_mode<synchronous>, transform_indices = @transform_1, window_bounds = array<i64: 64, 1>}, {pipeline_mode = #tpu.pipeline_mode<synchronous>, transform_indices = @transform_2, window_bounds = array<i64: 64, 1>}, {pipeline_mode = #tpu.pipeline_mode<synchronous>, transform_indices = @transform_3, window_bounds = array<i64: 64, 49>}]} {
    %c0 = arith.constant 0 : index
    %c0_0 = arith.constant 0 : index
    %0 = vector.load %arg1[%c0, %c0_0] : memref<64x49xf32, #tpu.memory_space<vmem>>, vector<64x49xf32>
    %cst = arith.constant dense<0.000000e+00> : vector<64xf32>
    %1 = vector.multi_reduction <add>, %0, %cst [1] : vector<64x49xf32> to vector<64xf32>
    %2 = vector.shape_cast %1 : vector<64xf32> to vector<64x1xf32>
    %cst_1 = arith.constant 0.0204081628 : f32
    %3 = vector.broadcast %cst_1 : f32 to vector<64x1xf32>
    %4 = arith.mulf %2, %3 : vector<64x1xf32>
    %5 = vector.broadcast %4 : vector<64x1xf32> to vector<64x49xf32>
    %6 = arith.subf %0, %5 : vector<64x49xf32>
    %7 = arith.mulf %6, %6 : vector<64x49xf32>
    %cst_2 = arith.constant dense<0.000000e+00> : vector<64xf32>
    %8 = vector.multi_reduction <add>, %7, %cst_2 [1] : vector<64x49xf32> to vector<64xf32>
    %9 = vector.shape_cast %8 : vector<64xf32> to vector<64x1xf32>
    %cst_3 = arith.constant 0.0204081628 : f32
    %10 = vector.broadcast %cst_3 : f32 to vector<64x1xf32>
    %11 = arith.mulf %9, %10 : vector<64x1xf32>
    %cst_4 = arith.constant 9.99999974E-6 : f32
    %12 = vector.broadcast %cst_4 : f32 to vector<64x1xf32>
    %13 = arith.addf %11, %12 : vector<64x1xf32>
    %14 = math.rsqrt %13 : vector<64x1xf32>
    %c0_5 = arith.constant 0 : index
    %c0_6 = arith.constant 0 : index
    %15 = vector.load %arg2[%c0_5, %c0_6] : memref<64x1xf32, #tpu.memory_space<vmem>>, vector<64x1xf32>
    %16 = arith.mulf %15, %14 : vector<64x1xf32>
    %c0_7 = arith.constant 0 : index
    %c0_8 = arith.constant 0 : index
    %17 = vector.load %arg3[%c0_7, %c0_8] : memref<64x1xf32, #tpu.memory_space<vmem>>, vector<64x1xf32>
    %18 = vector.broadcast %16 : vector<64x1xf32> to vector<64x49xf32>
    %19 = arith.mulf %6, %18 : vector<64x49xf32>
    %20 = vector.broadcast %17 : vector<64x1xf32> to vector<64x49xf32>
    %21 = arith.addf %19, %20 : vector<64x49xf32>
    %cst_9 = arith.constant 0.000000e+00 : f32
    %22 = vector.broadcast %cst_9 : f32 to vector<64x49xf32>
    %23 = arith.maximumf %21, %22 : vector<64x49xf32>
    %c0_10 = arith.constant 0 : index
    %c0_11 = arith.constant 0 : index
    %24 = vector.load %arg4[%c0_10, %c0_11] : memref<64x49xf32, #tpu.memory_space<vmem>>, vector<64x49xf32>
    tpu.vector_store %arg4[%c0_10, %c0_11], %23 {strides = array<i32>} : memref<64x49xf32, #tpu.memory_space<vmem>>, vector<64x49xf32>,
    return
  }
  func.func @transform_0(%arg0: i32) -> (i32, i32) {
    %c0_i32 = arith.constant 0 : i32
    %c0_i32_0 = arith.constant 0 : i32
    %c0_i32_1 = arith.constant 0 : i32
    return %c0_i32, %c0_i32_0 : i32, i32
  }
  func.func @transform_1(%arg0: i32) -> (i32, i32) {
    %c0_i32 = arith.constant 0 : i32
    %c0_i32_0 = arith.constant 0 : i32
    %c0_i32_1 = arith.constant 0 : i32
    return %c0_i32, %c0_i32_0 : i32, i32
  }
  func.func @transform_2(%arg0: i32) -> (i32, i32) {
    %c0_i32 = arith.constant 0 : i32
    %c0_i32_0 = arith.constant 0 : i32
    %c0_i32_1 = arith.constant 0 : i32
    return %c0_i32, %c0_i32_0 : i32, i32
  }
  func.func @transform_3(%arg0: i32) -> (i32, i32) {
    %c0_i32 = arith.constant 0 : i32
    %c0_i32_0 = arith.constant 0 : i32
    %c0_i32_1 = arith.constant 0 : i32
    return %c0_i32, %c0_i32_0 : i32, i32
  }
}

</mosaic_0001>

<bundles_post_ra>
// kernel: tpu_custom_call.1
= control target key start
LH: loop header
LB: loop body
LE: loop exit
PB: predicated region body
PF: predicated region fallthrough
CT: control target
= control target key end

     0   :  { %vm22_vm0 = vcmask 400384   ;;  %v278_v56 = vmov 0   ;;  %s459_s0 = inlined_call_operand.vmem [shape: f32[64,49], index: 0, kind: input, shape index: {}]   ;;  %s460_s2 = inlined_call_operand.vmem [shape: f32[64,1], index: 2, kind: input, shape index: {}]   ;;  %s461_s1 = inlined_call_operand.vmem [shape: f32[64,1], index: 1, kind: input, shape index: {}]   ;;  %s462_s3 = inlined_call_operand.vmem [shape: f32[64,49], index: 3, kind: output, shape index: {}]  }
   0x1   :  { %v14_v0 = vld [vmem:[%s459_s0] sm:$0xff]  ;;  %v15_v1 = vld [vmem:[%s459_s0 + $0x8] sm:$0xff]  ;;  %v16_v2 = vld [vmem:[%s459_s0 + $0x10] sm:$0xff]  ;;  %260 = vset.pattern.permute.xlu1 %v278_v56  ;;  %261 = vset.pattern.permute.xlu0 %v278_v56 }
   0x2   :  { %v23_v3 = vsel %vm22_vm0, %v14_v0, 0.0  ;;  %v29_v4 = vsel %vm22_vm0, %v16_v2, 0.0  ;;  %v17_v5 = vld [vmem:[%s459_s0 + $0x18] sm:$0xff]  ;;  %v26_v6 = vsel %vm22_vm0, %v15_v1, 0.0  ;;  %v18_v8 = vld [vmem:[%s459_s0 + $0x20] sm:$0xff]  ;;  %v19_v9 = vld [vmem:[%s459_s0 + $0x28] sm:$0xff] }
   0x3   :  { %24 = vadd.xlane.f32.xlu0 %v23_v3  ;;  %30 = vadd.xlane.f32.xlu1 %v29_v4  ;;  %v32_v7 = vsel %vm22_vm0, %v17_v5, 0.0  ;;  %v35_v10 = vsel %vm22_vm0, %v18_v8, 0.0  ;;  %v38_v11 = vsel %vm22_vm0, %v19_v9, 0.0  ;;  %v20_v12 = vld [vmem:[%s459_s0 + $0x30] sm:$0xff]  ;;  %v21_v13 = vld [vmem:[%s459_s0 + $0x38] sm:$0xff]  ;;  %v135_v57 = vld [vmem:[%s460_s2] sm:$0xff] }
   0x4   :  { %v41_v14 = vsel %vm22_vm0, %v20_v12, 0.0  ;;  %v44_v15 = vsel %vm22_vm0, %v21_v13, 0.0  ;;  %v136_v58 = vld [vmem:[%s460_s2 + $0x8] sm:$0xff]  ;;  %v137_v59 = vld [vmem:[%s460_s2 + $0x10] sm:$0xff]  ;;  %v138_v60 = vld [vmem:[%s460_s2 + $0x18] sm:$0xff] }
   0x5   :  { %v139_v61 = vld [vmem:[%s460_s2 + $0x20] sm:$0xff]  ;;  %v140_v62 = vld [vmem:[%s460_s2 + $0x28] sm:$0xff]  ;;  %v141_v56 = vld [vmem:[%s460_s2 + $0x30] sm:$0xff] }
   0x7   :  { %27 = vadd.xlane.f32.xlu0 %v26_v6  ;;  %33 = vadd.xlane.f32.xlu1 %v32_v7 }
   0xb   :  { %36 = vadd.xlane.f32.xlu0 %v35_v10  ;;  %39 = vadd.xlane.f32.xlu1 %v38_v11 }
   0xf   :  { %42 = vadd.xlane.f32.xlu0 %v41_v14  ;;  %45 = vadd.xlane.f32.xlu1 %v44_v15  ;;  %v119_v15 = vld [vmem:[%s461_s1] sm:$0xff] }
  0x90   :  { %v25_v16 = vpop.xlane.xlu0 %24  ;;  %v31_v17 = vpop.xlane.xlu1 %30 }
  0x91   :  { %v47_v18 = vmul.f32 0.020408163, %v25_v16  ;;  %v49_v19 = vmul.f32 0.020408163, %v31_v17 }
  0x93   :  { %v331_v20 = vsub.f32 %v14_v0, %v47_v18  ;;  %v333_v21 = vsub.f32 %v16_v2, %v49_v19 }
  0x94   :  { %v28_v22 = vpop.xlane.xlu0 %27  ;;  %v34_v23 = vpop.xlane.xlu1 %33 }
  0x95   :  { %v48_v24 = vmul.f32 0.020408163, %v28_v22  ;;  %v63_v25 = vmul.f32 %v331_v20, %v331_v20  ;;  %v50_v26 = vmul.f32 0.020408163, %v34_v23  ;;  %v65_v27 = vmul.f32 %v333_v21, %v333_v21  ;;  %v120_v23 = vld [vmem:[%s461_s1 + $0x8] sm:$0xff] }
  0x97   :  { %v339_v28 = vsub.f32 %v15_v1, %v48_v24  ;;  %v71_v29 = vsel %vm22_vm0, %v63_v25, 0.0  ;;  %v342_v30 = vsub.f32 %v17_v5, %v50_v26  ;;  %v77_v31 = vsel %vm22_vm0, %v65_v27, 0.0  ;;  %v121_v27 = vld [vmem:[%s461_s1 + $0x10] sm:$0xff] }
  0x98   :  { %72 = vadd.xlane.f32.xlu0 %v71_v29  ;;  %v37_v32 = vpop.xlane.xlu0 %36  ;;  %v40_v33 = vpop.xlane.xlu1 %39  ;;  %v142_v29 = vld [vmem:[%s460_s2 + $0x38] sm:$0xff] }
  0x99   :  { %v64_v34 = vmul.f32 %v339_v28, %v339_v28  ;;  %v51_v35 = vmul.f32 0.020408163, %v37_v32  ;;  %v52_v36 = vmul.f32 0.020408163, %v40_v33  ;;  %v66_v37 = vmul.f32 %v342_v30, %v342_v30 }
  0x9b   :  { %v74_v38 = vsel %vm22_vm0, %v64_v34, 0.0  ;;  %v350_v39 = vsub.f32 %v18_v8, %v51_v35  ;;  %v352_v40 = vsub.f32 %v19_v9, %v52_v36  ;;  %v80_v41 = vsel %vm22_vm0, %v66_v37, 0.0  ;;  %v122_v37 = vld [vmem:[%s461_s1 + $0x18] sm:$0xff] }
  0x9c   :  { %75 = vadd.xlane.f32.xlu1 %v74_v38  ;;  %78 = vadd.xlane.f32.xlu0 %v77_v31  ;;  %v43_v42 = vpop.xlane.xlu0 %42  ;;  %v46_v43 = vpop.xlane.xlu1 %45 }
  0x9d   :  { %v67_v44 = vmul.f32 %v350_v39, %v350_v39  ;;  %v53_v45 = vmul.f32 0.020408163, %v43_v42  ;;  %v54_v46 = vmul.f32 0.020408163, %v46_v43  ;;  %v68_v47 = vmul.f32 %v352_v40, %v352_v40  ;;  %v123_v43 = vld [vmem:[%s461_s1 + $0x20] sm:$0xff] }
  0x9f   :  { %v83_v48 = vsel %vm22_vm0, %v67_v44, 0.0  ;;  %v360_v49 = vsub.f32 %v20_v12, %v53_v45  ;;  %v362_v50 = vsub.f32 %v21_v13, %v54_v46  ;;  %v86_v51 = vsel %vm22_vm0, %v68_v47, 0.0  ;;  %v124_v46 = vld [vmem:[%s461_s1 + $0x28] sm:$0xff] }
  0xa0   :  { %81 = vadd.xlane.f32.xlu1 %v80_v41  ;;  %84 = vadd.xlane.f32.xlu0 %v83_v48 }
  0xa1   :  { %v69_v52 = vmul.f32 %v360_v49, %v360_v49  ;;  %v70_v53 = vmul.f32 %v362_v50, %v362_v50 }
  0xa3   :  { %v89_v54 = vsel %vm22_vm0, %v69_v52, 0.0  ;;  %v92_v55 = vsel %vm22_vm0, %v70_v53, 0.0 }
  0xa4   :  { %87 = vadd.xlane.f32.xlu1 %v86_v51  ;;  %90 = vadd.xlane.f32.xlu0 %v89_v54  ;;  %v125_v51 = vld [vmem:[%s461_s1 + $0x30] sm:$0xff]  ;;  %v126_v54 = vld [vmem:[%s461_s1 + $0x38] sm:$0xff] }
  0xa8   :  { %93 = vadd.xlane.f32.xlu1 %v92_v55 }
  0xb9   :  { %193 = vperm.xlu1 %260, %v135_v57  }
  0xba   :  { %198 = vperm.xlu0 %261, %v136_v58  }
  0xbd   :  { %203 = vperm.xlu1 %260, %v137_v59  }
  0xbe   :  { %208 = vperm.xlu0 %261, %v138_v60  }
  0xc1   :  { %213 = vperm.xlu1 %260, %v139_v61  }
  0xc2   :  { %218 = vperm.xlu0 %261, %v140_v62  }
 0x125   :  { %v73_v63 = vpop.xlane.xlu0 %72 }
 0x126   :  { %v95_v0 = vmul.f32 0.020408163, %v73_v63 }
 0x128   :  { %v103_v1 = vadd.f32 1e-05, %v95_v0 }
 0x129   :  { %v76_v2 = vpop.xlane.xlu1 %75  ;;  %v79_v3 = vpop.xlane.xlu0 %78 }
 0x12a   :  { %262 = vrsqrt.f32 %v103_v1  ;;  %v96_v4 = vmul.f32 0.020408163, %v76_v2  ;;  %v97_v5 = vmul.f32 0.020408163, %v79_v3 }
 0x12c   :  { %v104_v6 = vadd.f32 1e-05, %v96_v4  ;;  %v105_v7 = vadd.f32 1e-05, %v97_v5 }
 0x12d   :  { %v82_v8 = vpop.xlane.xlu1 %81  ;;  %v85_v9 = vpop.xlane.xlu0 %84 }
 0x12e   :  { %264 = vrsqrt.f32 %v104_v6  ;;  %v98_v10 = vmul.f32 0.020408163, %v82_v8  ;;  %v99_v11 = vmul.f32 0.020408163, %v85_v9 }
 0x12f   :  { %266 = vrsqrt.f32 %v105_v7 }
 0x130   :  { %v106_v12 = vadd.f32 1e-05, %v98_v10  ;;  %v107_v14 = vadd.f32 1e-05, %v99_v11 }
 0x131   :  { %v88_v13 = vpop.xlane.xlu1 %87  ;;  %v91_v17 = vpop.xlane.xlu0 %90 }
 0x132   :  { %268 = vrsqrt.f32 %v106_v12  ;;  %v100_v16 = vmul.f32 0.020408163, %v88_v13  ;;  %v101_v24 = vmul.f32 0.020408163, %v91_v17 }
 0x133   :  { %270 = vrsqrt.f32 %v107_v14 }
 0x134   :  { %v263_v18 = vpop.eup %262  ;;  %v108_v22 = vadd.f32 1e-05, %v100_v16  ;;  %v109_v33 = vadd.f32 1e-05, %v101_v24 }
 0x135   :  { %v127_v19 = vmul.f32 %v263_v18, %v119_v15  ;;  %v94_v25 = vpop.xlane.xlu1 %93 }
 0x136   :  { %272 = vrsqrt.f32 %v108_v22  ;;  %v102_v34 = vmul.f32 0.020408163, %v94_v25 }
 0x137   :  { %145 = vperm.xlu0 %261, %v127_v19   ;;  %274 = vrsqrt.f32 %v109_v33 }
 0x138   :  { %v265_v26 = vpop.eup %264  ;;  %v110_v38 = vadd.f32 1e-05, %v102_v34 }
 0x139   :  { %v267_v31 = vpop.eup %266  ;;  %v128_v32 = vmul.f32 %v265_v26, %v120_v23  ;;  %v199_v57 = vpop.permute.xlu0 %198 }
 0x13a   :  { %v129_v35 = vmul.f32 %v267_v31, %v121_v27  ;;  %276 = vrsqrt.f32 %v110_v38  ;;  %v194_v58 = vpop.permute.xlu1 %193 }
 0x13b   :  { %150 = vperm.xlu1 %260, %v128_v32   ;;  %228 = vperm.xlu0 %261, %v142_v29  }
 0x13c   :  { %v269_v36 = vpop.eup %268 }
 0x13d   :  { %v130_v41 = vmul.f32 %v269_v36, %v122_v37  ;;  %v271_v42 = vpop.eup %270  ;;  %v209_v59 = vpop.permute.xlu0 %208 }
 0x13e   :  { %v131_v44 = vmul.f32 %v271_v42, %v123_v43  ;;  %v204_v60 = vpop.permute.xlu1 %203 }
 0x13f   :  { %155 = vperm.xlu1 %260, %v129_v35  }
 0x140   :  { %v273_v45 = vpop.eup %272 }
 0x141   :  { %v132_v47 = vmul.f32 %v273_v45, %v124_v46  ;;  %v275_v48 = vpop.eup %274  ;;  %v219_v61 = vpop.permute.xlu0 %218 }
 0x142   :  { %v133_v52 = vmul.f32 %v275_v48, %v125_v51  ;;  %v214_v62 = vpop.permute.xlu1 %213 }
 0x143   :  { %160 = vperm.xlu1 %260, %v130_v41  }
 0x144   :  { %v277_v53 = vpop.eup %276 }
 0x145   :  { %v134_v55 = vmul.f32 %v277_v53, %v126_v54 }
 0x147   :  { %165 = vperm.xlu1 %260, %v131_v44  }
 0x14b   :  { %170 = vperm.xlu1 %260, %v132_v47  }
 0x14f   :  { %175 = vperm.xlu1 %260, %v133_v52  }
 0x153   :  { %180 = vperm.xlu1 %260, %v134_v55  }
 0x157   :  { %223 = vperm.xlu1 %260, %v141_v56  }
 0x1b6   :  { %v146_v63 = vpop.permute.xlu0 %145 }
 0x1b7   :  { %v183_v0 = vmul.f32 %v146_v63, %v331_v20 }
 0x1b9   :  { %v231_v1 = vadd.f32 %v194_v58, %v183_v0 }
 0x1ba   :  { %v151_v2 = vpop.permute.xlu1 %150  ;;  %v229_v23 = vpop.permute.xlu0 %228 }
 0x1bb   :  { %v239_v3 = vmax.f32 %v231_v1, 0.0  ;;  %v184_v4 = vmul.f32 %v151_v2, %v339_v28 }
 0x1bd   :  { %247 = vst.msk [vmem:[%s462_s3] sm:$0xff] %vm22_vm0, %v239_v3  ;;  %v232_v5 = vadd.f32 %v199_v57, %v184_v4 }
 0x1be   :  { %v156_v6 = vpop.permute.xlu1 %155 }
 0x1bf   :  { %v240_v7 = vmax.f32 %v232_v5, 0.0  ;;  %v185_v8 = vmul.f32 %v156_v6, %v333_v21 }
 0x1c1   :  { %248 = vst.msk [vmem:[%s462_s3 + $0x8] sm:$0xff] %vm22_vm0, %v240_v7  ;;  %v233_v20 = vadd.f32 %v204_v60, %v185_v8 }
 0x1c2   :  { %v161_v9 = vpop.permute.xlu1 %160 }
 0x1c3   :  { %v241_v10 = vmax.f32 %v233_v20, 0.0  ;;  %v186_v28 = vmul.f32 %v161_v9, %v342_v30 }
 0x1c5   :  { %249 = vst.msk [vmem:[%s462_s3 + $0x10] sm:$0xff] %vm22_vm0, %v241_v10  ;;  %v234_v11 = vadd.f32 %v209_v59, %v186_v28 }
 0x1c6   :  { %v166_v12 = vpop.permute.xlu1 %165 }
 0x1c7   :  { %v242_v13 = vmax.f32 %v234_v11, 0.0  ;;  %v187_v21 = vmul.f32 %v166_v12, %v350_v39 }
 0x1c9   :  { %250 = vst.msk [vmem:[%s462_s3 + $0x18] sm:$0xff] %vm22_vm0, %v242_v13  ;;  %v235_v14 = vadd.f32 %v214_v62, %v187_v21 }
 0x1ca   :  { %v171_v15 = vpop.permute.xlu1 %170 }
 0x1cb   :  { %v243_v16 = vmax.f32 %v235_v14, 0.0  ;;  %v188_v30 = vmul.f32 %v171_v15, %v352_v40 }
 0x1cd   :  { %251 = vst.msk [vmem:[%s462_s3 + $0x20] sm:$0xff] %vm22_vm0, %v243_v16  ;;  %v236_v17 = vadd.f32 %v219_v61, %v188_v30 }
 0x1ce   :  { %v176_v18 = vpop.permute.xlu1 %175 }
 0x1cf   :  { %v244_v19 = vmax.f32 %v236_v17, 0.0  ;;  %v189_v24 = vmul.f32 %v176_v18, %v360_v49 }
 0x1d1   :  { %252 = vst.msk [vmem:[%s462_s3 + $0x28] sm:$0xff] %vm22_vm0, %v244_v19 }
 0x1d2   :  { %v181_v39 = vpop.permute.xlu1 %180 }
 0x1d3   :  { %v190_v22 = vmul.f32 %v181_v39, %v362_v50 }
 0x1d5   :  { %v238_v40 = vadd.f32 %v229_v23, %v190_v22 }
 0x1d6   :  { %v224_v25 = vpop.permute.xlu1 %223 }
 0x1d7   :  { %v246_v26 = vmax.f32 %v238_v40, 0.0  ;;  %v237_v27 = vadd.f32 %v224_v25, %v189_v24 }
 0x1d9   :  { %254 = vst.msk [vmem:[%s462_s3 + $0x38] sm:$0xff] %vm22_vm0, %v246_v26  ;;  %v245_v29 = vmax.f32 %v237_v27, 0.0 }
 0x1db   :  { %253 = vst.msk [vmem:[%s462_s3 + $0x30] sm:$0xff] %vm22_vm0, %v245_v29 }

</bundles_post_ra>
